<compile_context>
chip_gen: v6e
topology: v6e:2x2x1
jax: 0.10.0
libtpu: 0.0.40
codegen_flags: <defaults>
</compile_context>

<pallas_src>
import numpy as np
import jax
import jax.numpy as jnp
from jax.experimental import pallas as pl
from jax.experimental.pallas import tpu as pltpu


def _round_up(x: int, m: int) -> int:
    return (x + m - 1) // m * m


def _make_halo_gather_kernel(block_rows: int):
    """Gather `block_rows` output rows per grid step from the VMEM-resident
    table: per group of 8 rows, 8 dynamic 1-row loads -> one (8, D) sublane
    concat (XLU) -> one unmasked, aligned (8, D) store."""
    assert block_rows % 8 == 0
    n_groups = block_rows // 8
    unroll = True if n_groups <= 4 else 4

    def kernel(idx_ref, table_ref, out_ref):
        base = pl.program_id(0) * block_rows

        def group(g, carry):
            gb = base + g * 8
            # 8 masked 1-sublane loads (vld slots: 2+1) ...
            rows = [table_ref[pl.ds(idx_ref[gb + j], 1), :] for j in range(8)]
            # ... packed into one (8, D) tile on the XLU ...
            tile = jnp.concatenate(rows, axis=0)
            # ... and written with a single unmasked, 8-aligned (8, D) store
            # (the store slot is the binding unit, esp. v5e's single vst).
            dst = pl.multiple_of(g * 8, 8)
            out_ref[pl.ds(dst, 8), :] = tile.astype(out_ref.dtype)
            return carry

        jax.lax.fori_loop(0, n_groups, group, 0, unroll=unroll)

    return kernel


class HaloExchanger:
    """JAX/Pallas port of easier's HaloExchanger (single-device simulation of
    the p2p exchange: the data received from rank u is u's local rows
    send_lidx[u][rank])."""

    def __init__(self, is_for_selector, rank, world_size, elempart_lengths,
                 send_lidx, element_tensor_shape, dtype, block_rows=1024):
        self.is_for_selector = is_for_selector
        self.rank = rank
        self.world_size = world_size
        self.elempart_lengths = [int(l) for l in elempart_lengths]
        self.input_elempart_length = self.elempart_lengths[rank]
        self.element_tensor_shape = tuple(element_tensor_shape)
        self.chunk_dtype = dtype
        self.send_lidx = send_lidx  # full W x W table (simulation / reference)
        self.runtime_halos_lidxes = [send_lidx[rank][u] for u in range(world_size)]
        self.runtime_recv_lengths = [int(send_lidx[u][rank].shape[0])
                                     for u in range(world_size)]
        self._D = int(np.prod(self.element_tensor_shape))
        # Lane-dense stores: pad the feature dim to a multiple of 128.
        self._D_pad = max(128, _round_up(self._D, 128))

        # ---- static gather plan (host, built ONCE per exchanger) ----
        r = rank
        pieces = []  # (source_rank, row indices into that rank's local), concat order
        for u in range(world_size):
            if u != r:
                lidx = np.asarray(send_lidx[u][r]).astype(np.int32)
                if lidx.shape[0] > 0:
                    pieces.append((u, lidx))
            else:
                own = np.asarray(send_lidx[r][r]).astype(np.int32)
                if own.shape[0] > 0:
                    rows = (np.arange(self.input_elempart_length, dtype=np.int32)
                            if is_for_selector else own)
                    if rows.shape[0] > 0:
                        pieces.append((r, rows))

        self.chunk_len = int(sum(p[1].shape[0] for p in pieces))

        # mirror of the torch module's init_buffers() bookkeeping (sanity)
        local_size = int(send_lidx[r][r].shape[0])
        if is_for_selector:
            local_size = self.input_elempart_length if local_size > 0 else 0
        recv = sum(self.runtime_recv_lengths[u] for u in range(world_size)
                   if u != r and self.runtime_recv_lengths[u] > 0)
        assert self.chunk_len == recv + local_size

        if self.chunk_len == 0:
            self._forward_fn = None
            return

        # Contributing sources; contiguous offsets in the staged table (the
        # staging is a plain XLA concat now, so no per-source alignment).
        self._src_ranks = [u for (u, _) in pieces]
        self._src_lens = [self.elempart_lengths[u] for u in self._src_ranks]
        offs, acc = [], 0
        for n in self._src_lens:
            offs.append(acc)
            acc += n
        self._table_rows = acc
        self._table_rows_pad = _round_up(acc, 8)
        # Padded gather indices point at staged-table row 0; keep it valid.
        assert self._table_rows >= 1

        # Global (staged-table coordinate) gather index, padded so the output
        # block grid divides evenly; padded rows read row 0, sliced off later.
        gidx = np.concatenate([offs[k] + rows for k, (_, rows) in enumerate(pieces)])
        self._block_rows = min(_round_up(max(8, int(block_rows)), 8),
                               _round_up(self.chunk_len, 8))
        self._n_pad = _round_up(self.chunk_len, self._block_rows)
        gidx = np.pad(gidx, (0, self._n_pad - self.chunk_len)).astype(np.int32)
        # TODO(synk): for very large halos the (n_pad,) scalar prefetch pads to
        #             next_pow2(4*n_pad) bytes of SMEM; at that scale chunk the
        #             prefetch or move indices to per-step (1, R) VMEM blocks.
        self._gather_idx = jnp.asarray(gidx)  # cached on device

        self._forward_fn = self._build_forward_fn()

    def _build_forward_fn(self):
        D, D_pad = self._D, self._D_pad
        R = self._block_rows
        n_pad = self._n_pad
        n_out = self.chunk_len
        table_rows = self._table_rows
        table_rows_pad = self._table_rows_pad
        out_dtype = self.chunk_dtype
        ets = self.element_tensor_shape
        grid = n_pad // R
        itemsize = jnp.dtype(out_dtype).itemsize

        # VMEM budget: resident table (counted x2 for pipeline buffers) +
        # double-buffered (R, D_pad) output blocks + headroom.
        need = (2 * table_rows_pad + 2 * R) * D_pad * itemsize + (2 << 20)
        try:
            phys = int(pltpu.get_tpu_info().vmem_capacity_bytes)
        except Exception:
            phys = 64 * 1024 * 1024
        vmem_limit = int(min(max(need, 32 << 20), int(phys * 0.85)))

        kernel = _make_halo_gather_kernel(R)

        bytes_accessed = (table_rows_pad + n_pad) * D_pad * itemsize + 4 * n_pad

        call = pl.pallas_call(
            kernel,
            out_shape=jax.ShapeDtypeStruct((n_pad, D_pad), out_dtype),
            grid_spec=pltpu.PrefetchScalarGridSpec(
                num_scalar_prefetch=1,
                grid=(grid,),
                # Staged table fully VMEM-resident (constant block index ->
                # fetched from HBM exactly once).
                in_specs=[pl.BlockSpec((table_rows_pad, D_pad),
                                       lambda i, idx: (0, 0))],
                # Dense (R, D_pad) output blocks: sublane/lane-aligned stores.
                out_specs=pl.BlockSpec((R, D_pad), lambda i, idx: (i, 0)),
            ),
            # No cross-iteration dependence any more: every grid step only
            # reads the resident table + its SMEM indices and writes its own
            # output block, so it can shard across v7x's two TensorCores.
            compiler_params=pltpu.CompilerParams(
                dimension_semantics=("parallel",),
                vmem_limit_bytes=vmem_limit,
            ),
            cost_estimate=pl.CostEstimate(flops=0, transcendentals=0,
                                          bytes_accessed=int(bytes_accessed)),
        )

        def fwd(gather_idx, *contrib_locals):
            # Staging = one XLA concat into a lane/sublane padded table
            # (replaces the v2 in-kernel step-0 scratch staging).
            srcs = [x.reshape(x.shape[0], D).astype(out_dtype)
                    for x in contrib_locals]
            table = jnp.concatenate(srcs, axis=0) if len(srcs) > 1 else srcs[0]
            table = jnp.pad(table, ((0, table_rows_pad - table_rows),
                                    (0, D_pad - D)))
            out = call(gather_idx, table)
            if n_pad == n_out and D_pad == D:
                return out.reshape((n_out,) + ets)      # no extra HBM copy
            return out[:n_out, :D].reshape((n_out,) + ets)

        return jax.jit(fwd)

    def forward(self, all_locals):
        """all_locals[u]: rank-u local tensor, shape (len_u,) + element_tensor_shape.
        Returns chunk_v of shape (chunk_len,) + element_tensor_shape for self.rank."""
        if self.chunk_len == 0:
            return jnp.zeros((0,) + self.element_tensor_shape, self.chunk_dtype)
        contrib = []
        for k, u in enumerate(self._src_ranks):
            x = all_locals[u]
            assert int(x.shape[0]) == self._src_lens[k]
            contrib.append(x)
        return self._forward_fn(self._gather_idx, *contrib)


def _reference_chunk(exchanger, all_locals):
    """Pure-JAX reference mirroring the torch semantics (gathers + concat)."""
    W, r = exchanger.world_size, exchanger.rank
    pieces = []
    for u in range(W):
        if u != r:
            lidx = exchanger.send_lidx[u][r]
            if lidx.shape[0] > 0:
                pieces.append(jnp.take(all_locals[u], lidx, axis=0))
        else:
            if exchanger.runtime_halos_lidxes[r].shape[0] > 0:
                if exchanger.is_for_selector:
                    pieces.append(all_locals[r])
                else:
                    pieces.append(jnp.take(all_locals[r],
                                           exchanger.runtime_halos_lidxes[r], axis=0))
    return jnp.concatenate(pieces, axis=0).astype(exchanger.chunk_dtype)


if __name__ == "__main__":
    key = jax.random.PRNGKey(0)
    W = 3
    rank = 1
    lens = [10, 12, 8]                  # per-rank input_elempart_length
    element_tensor_shape = (4, 32)      # D = 128 (lane-aligned)
    dtype = jnp.float32

    keys = jax.random.split(key, 2 * W + W * W)

    # deterministic per-rank local tensors (two element shapes)
    all_locals = [
        jax.random.normal(keys[u], (lens[u],) + element_tensor_shape, dtype)
        for u in range(W)
    ]
    all_locals_d5 = [
        jax.random.normal(keys[W + u], (lens[u], 5), dtype)   # D=5 -> padded to 128
        for u in range(W)
    ]

    # deterministic send index lists: send_lidx[u][v] = rows of u's local sent to v
    send_counts = [[0, 3, 2],
                   [4, 5, 3],
                   [2, 3, 0]]
    send_lidx = []
    kidx = 2 * W
    for u in range(W):
        row = []
        for v in range(W):
            c = send_counts[u][v]
            k = keys[kidx]
            kidx += 1
            if c > 0:
                row.append(jax.random.randint(k, (c,), 0, lens[u], dtype=jnp.int32))
            else:
                row.append(jnp.zeros((0,), jnp.int32))
        send_lidx.append(row)

    # block_rows=8 exercises the multi-grid-step path; block_rows=1024 the
    # single-big-block path.
    for is_for_selector in (True, False):
        for block_rows in (8, 1024):
            hx = HaloExchanger(is_for_selector, rank, W, lens, send_lidx,
                               element_tensor_shape, dtype, block_rows=block_rows)
            chunk = jax.block_until_ready(hx.forward(all_locals))
            ref = _reference_chunk(hx, all_locals)
            assert chunk.shape == (hx.chunk_len,) + element_tensor_shape, chunk.shape
            assert chunk.dtype == dtype
            assert bool(jnp.array_equal(chunk.reshape(ref.shape), ref)), (
                is_for_selector, block_rows)

    # non-lane-aligned element shape: exercises the D -> 128 padding path
    hx5 = HaloExchanger(False, rank, W, lens, send_lidx, (5,), dtype,
                        block_rows=64)
    chunk5 = jax.block_until_ready(hx5.forward(all_locals_d5))
    ref5 = _reference_chunk(hx5, all_locals_d5)
    assert chunk5.shape == (hx5.chunk_len, 5)
    assert bool(jnp.array_equal(chunk5, ref5))

    print("KERNEL_OK")
</pallas_src>

<mosaic_0001>
module attributes {stable_mosaic.version = 11 : i64} {
  func.func @kernel(%arg0: i32, %arg1: memref<24xi32, #tpu.memory_space<smem>>, %arg2: memref<32x128xf32, #tpu.memory_space<vmem>>, %arg3: memref<8x128xf32, #tpu.memory_space<vmem>>) attributes {dimension_semantics = [#tpu.dimension_semantics<parallel>], iteration_bounds = array<i64: 3>, scalar_prefetch = 1 : i64, scratch_operands = 0 : i64, tpu.core_type = #tpu.core_type<tc>, window_params = [{pipeline_mode = #tpu.pipeline_mode<synchronous>, transform_indices = @transform_0, window_bounds = array<i64: 32, 128>}, {transform_indices = @transform_1, window_bounds = array<i64: 8, 128>}]} {
    %c8_i32 = arith.constant 8 : i32
    %0 = arith.muli %arg0, %c8_i32 : i32
    %c0_i32 = arith.constant 0 : i32
    %c8_i32_0 = arith.constant 8 : i32
    %1 = arith.muli %c0_i32, %c8_i32_0 : i32
    %2 = arith.addi %0, %1 : i32
    %c0_i32_1 = arith.constant 0 : i32
    %3 = arith.addi %2, %c0_i32_1 : i32
    %4 = arith.index_cast %3 : i32 to index
    %5 = memref.load %arg1[%4] : memref<24xi32, #tpu.memory_space<smem>>
    %6 = arith.index_cast %5 : i32 to index
    %c0 = arith.constant 0 : index
    %7 = vector.load %arg2[%6, %c0] : memref<32x128xf32, #tpu.memory_space<vmem>>, vector<1x128xf32>
    %c1_i32 = arith.constant 1 : i32
    %8 = arith.addi %2, %c1_i32 : i32
    %9 = arith.index_cast %8 : i32 to index
    %10 = memref.load %arg1[%9] : memref<24xi32, #tpu.memory_space<smem>>
    %11 = arith.index_cast %10 : i32 to index
    %c0_2 = arith.constant 0 : index
    %12 = vector.load %arg2[%11, %c0_2] : memref<32x128xf32, #tpu.memory_space<vmem>>, vector<1x128xf32>
    %c2_i32 = arith.constant 2 : i32
    %13 = arith.addi %2, %c2_i32 : i32
    %14 = arith.index_cast %13 : i32 to index
    %15 = memref.load %arg1[%14] : memref<24xi32, #tpu.memory_space<smem>>
    %16 = arith.index_cast %15 : i32 to index
    %c0_3 = arith.constant 0 : index
    %17 = vector.load %arg2[%16, %c0_3] : memref<32x128xf32, #tpu.memory_space<vmem>>, vector<1x128xf32>
    %c3_i32 = arith.constant 3 : i32
    %18 = arith.addi %2, %c3_i32 : i32
    %19 = arith.index_cast %18 : i32 to index
    %20 = memref.load %arg1[%19] : memref<24xi32, #tpu.memory_space<smem>>
    %21 = arith.index_cast %20 : i32 to index
    %c0_4 = arith.constant 0 : index
    %22 = vector.load %arg2[%21, %c0_4] : memref<32x128xf32, #tpu.memory_space<vmem>>, vector<1x128xf32>
    %c4_i32 = arith.constant 4 : i32
    %23 = arith.addi %2, %c4_i32 : i32
    %24 = arith.index_cast %23 : i32 to index
    %25 = memref.load %arg1[%24] : memref<24xi32, #tpu.memory_space<smem>>
    %26 = arith.index_cast %25 : i32 to index
    %c0_5 = arith.constant 0 : index
    %27 = vector.load %arg2[%26, %c0_5] : memref<32x128xf32, #tpu.memory_space<vmem>>, vector<1x128xf32>
    %c5_i32 = arith.constant 5 : i32
    %28 = arith.addi %2, %c5_i32 : i32
    %29 = arith.index_cast %28 : i32 to index
    %30 = memref.load %arg1[%29] : memref<24xi32, #tpu.memory_space<smem>>
    %31 = arith.index_cast %30 : i32 to index
    %c0_6 = arith.constant 0 : index
    %32 = vector.load %arg2[%31, %c0_6] : memref<32x128xf32, #tpu.memory_space<vmem>>, vector<1x128xf32>
    %c6_i32 = arith.constant 6 : i32
    %33 = arith.addi %2, %c6_i32 : i32
    %34 = arith.index_cast %33 : i32 to index
    %35 = memref.load %arg1[%34] : memref<24xi32, #tpu.memory_space<smem>>
    %36 = arith.index_cast %35 : i32 to index
    %c0_7 = arith.constant 0 : index
    %37 = vector.load %arg2[%36, %c0_7] : memref<32x128xf32, #tpu.memory_space<vmem>>, vector<1x128xf32>
    %c7_i32 = arith.constant 7 : i32
    %38 = arith.addi %2, %c7_i32 : i32
    %39 = arith.index_cast %38 : i32 to index
    %40 = memref.load %arg1[%39] : memref<24xi32, #tpu.memory_space<smem>>
    %41 = arith.index_cast %40 : i32 to index
    %c0_8 = arith.constant 0 : index
    %42 = vector.load %arg2[%41, %c0_8] : memref<32x128xf32, #tpu.memory_space<vmem>>, vector<1x128xf32>
    %43 = tpu.concatenate %7, %12, %17, %22, %27, %32, %37, %42 in 0 : vector<1x128xf32>, vector<1x128xf32>, vector<1x128xf32>, vector<1x128xf32>, vector<1x128xf32>, vector<1x128xf32>, vector<1x128xf32>, vector<1x128xf32> -> vector<8x128xf32>
    %c8_i32_9 = arith.constant 8 : i32
    %44 = arith.muli %c0_i32, %c8_i32_9 : i32
    %45 = tpu.assume_multiple %44, 8 : i32
    %46 = arith.index_cast %45 : i32 to index
    %c0_10 = arith.constant 0 : index
    %47 = vector.load %arg3[%46, %c0_10] : memref<8x128xf32, #tpu.memory_space<vmem>>, vector<8x128xf32>
    tpu.vector_store %arg3[%46, %c0_10], %43 {strides = array<i32>} : memref<8x128xf32, #tpu.memory_space<vmem>>, vector<8x128xf32>,
    %c1_i32_11 = arith.constant 1 : i32
    return
  }
  func.func @transform_0(%arg0: i32, %arg1: memref<24xi32, #tpu.memory_space<smem>>) -> (i32, i32) {
    %c0_i32 = arith.constant 0 : i32
    %c0_i32_0 = arith.constant 0 : i32
    %c0_i32_1 = arith.constant 0 : i32
    return %c0_i32, %c0_i32_0 : i32, i32
  }
  func.func @transform_1(%arg0: i32, %arg1: memref<24xi32, #tpu.memory_space<smem>>) -> (i32, i32) {
    %c0_i32 = arith.constant 0 : i32
    %c0_i32_0 = arith.constant 0 : i32
    return %arg0, %c0_i32 : i32, i32
  }
}

</mosaic_0001>

<bundles_post_ra>
// kernel: fwd.1
= control target key start
LH: loop header
LB: loop body
LE: loop exit
PB: predicated region body
PF: predicated region fallthrough
CT: control target
= control target key end

     0   :  { %s318_s0 = inlined_call_operand.vmem [shape: s32[24], index: 0, kind: input, shape index: {}]   ;;  %s319_s1 = inlined_call_operand.vmem [shape: f32[32,128], index: 1, kind: input, shape index: {}]   ;;  %s320_s2 = inlined_call_operand.vmem [shape: f32[24,128], index: 2, kind: output, shape index: {}]  }
   0x1   :  { %s7_s11 = sshll.u32 %s318_s0, 4  ;;  %s8_s11 = int_to_ptr.vmem [resolvable:$true] %s7_s11 }
   0x2   :  { %s236_s12 = scalar_lea.vmem %s8_s11, 16  ;;  %p241_p1 = scmp.lt.s32.totalorder %s8_s11, %s8_s11 }
   0x3   :  { %p237_p0 = scmp.ne.s32.totalorder %s8_s11, %s236_s12  ;;  %p242_p2 = scmp.lt.s32.totalorder %s236_s12, %s236_s12 }
   0x5   :  { %p243_p3 = por %p242_p2, %p241_p1 }
   0x7   :  { %p244_p4 = pnand %p243_p3, %p237_p0 }
   0x9   :  { %247 = shalt.err (!%p244_p4)  }
   0xa   :  { %s258_s13 = smov [#allocation3]  }
   0xb   :  { %10 = dma.vmem_to_smem %s8_s11, 16, %s258_s13, [#allocation2] }
   0xc   :  { %252 = dma.done.wait [#allocation2], 16 }
   0xd   :  { %253 = vsyncadd [#allocation2], 4294967280 }
   0xe   :  { %12 = sfence }
   0xf   :  { %s277_s14 = smov 0  }
  0x10 LB: > { %s219_s0 = sadd.s32 4294967295, %s256_s14   ;;  %p222_p5 = scmp.ge.s32.totalorder %s256_s14, 1  ;;  %s256_s14 = sphi %s277_s14, %s18_s14  }
  0x11   : > { %p84_p6 = scmp.lt.s32.totalorder %s256_s14, 4 }
  0x13   : > { %p85_p7 = pnand %p222_p5, %p84_p6 }
  0x14   : > { %p98_p8 = scmp.lt.s32.totalorder (!%p85_p7), %s219_s0, 2  ;;  %s224_s15 = sshll.u32 (!%p85_p7), %s219_s0, 3 }
  0x15   : > { %88 = sbr.rel (%p85_p7) target bundleno = 42 (0x2a), region = 24  ;;  %s103_s16 = sld [smem:[#allocation3 + %s224_s15]] (!%p85_p7) }
  0x16   : > { %s106_s17 = sadd.s32 (!%p85_p7), 1, %s224_s15  ;;  %s110_s19 = sadd.s32 (!%p85_p7), 2, %s224_s15 }
  0x17   : > { %s107_s18 = sld [smem:[#allocation3 + %s106_s17]] (!%p85_p7)  ;;  %s114_s21 = sadd.s32 (!%p85_p7), 3, %s224_s15 }
  0x18   : > { %s111_s20 = sld [smem:[#allocation3 + %s110_s19]] (!%p85_p7)  ;;  %s118_s23 = sadd.s32 (!%p85_p7), 4, %s224_s15 }
  0x19   : > { %s115_s22 = sld [smem:[#allocation3 + %s114_s21]] (!%p85_p7)  ;;  %s122_s28 = sadd.s32 (!%p85_p7), 5, %s224_s15 }
  0x1a   : > { %s322_s0 = smov (!%p98_p8, %s219_s0), 2  ;;  %s119_s27 = sld [smem:[#allocation3 + %s118_s23]]  ;;  %vm155_vm0 = vcmask 1040384   ;;  %vm157_vm1 = vcmask 1041408   ;;  %vm159_vm2 = vcmask 1042432   ;;  %vm161_vm3 = vcmask 1043456  }
  0x1b   : > { %s104_s26 = scalar_lea.vmem %s319_s1, %s103_s16  ;;  %s126_s29 = sadd.s32 6, %s224_s15  ;;  %vm163_vm4 = vcmask 1044480   ;;  %vm165_vm5 = vcmask 1045504   ;;  %vm167_vm6 = vcmask 1046528  }
  0x1c   : > { %s123_s5 = sld [smem:[#allocation3 + %s122_s28]]  ;;  %v105_v0 = vld [vmem:[%s104_s26] sm:$0x1]  ;;  %s130_s10 = sadd.s32 7, %s224_s15 }
  0x1d   : > { %s108_s4 = scalar_lea.vmem %s319_s1, %s107_s18  ;;  %s127_s9 = sld [smem:[#allocation3 + %s126_s29]] }
  0x1e   : > { %v109_v1 = vld [vmem:[%s108_s4] sm:$0x1]  ;;  %s112_s8 = scalar_lea.vmem %s319_s1, %s111_s20  ;;  %s131_s16 = sld [smem:[#allocation3 + %s130_s10]] }
  0x1f   : > { %v113_v2 = vld [vmem:[%s112_s8] sm:$0x1]  ;;  %v135_v3 = vrot.slane %v109_v1, 7  ;;  %s116_s13 = scalar_lea.vmem %s319_s1, %s115_s22  ;;  %s223_s25 = sshll.u32 %s322_s0, 3 }
  0x20   : > { %v138_v4 = vrot.slane %v113_v2, 6  ;;  %v117_v5 = vld [vmem:[%s116_s13] sm:$0x1]  ;;  %s120_s19 = scalar_lea.vmem %s319_s1, %s119_s27  ;;  %s101_s3 = scalar_lea.vmem %s320_s2, %s223_s25 }
  0x21   : > { %v156_v6 = vsel %vm155_vm0, %v105_v0, %v135_v3  ;;  %v121_v7 = vld [vmem:[%s120_s19] sm:$0x1]  ;;  %v141_v8 = vrot.slane %v117_v5, 5 }
  0x22   : > { %v158_v9 = vsel %vm157_vm1, %v156_v6, %v138_v4  ;;  %s124_s21 = scalar_lea.vmem %s319_s1, %s123_s5  ;;  %v144_v10 = vrot.slane %v121_v7, 4 }
  0x23   : > { %v125_v11 = vld [vmem:[%s124_s21] sm:$0x1]  ;;  %s128_s24 = scalar_lea.vmem %s319_s1, %s127_s9  ;;  %v160_v12 = vsel %vm159_vm2, %v158_v9, %v141_v8 }
  0x24   : > { %v129_v13 = vld [vmem:[%s128_s24] sm:$0x1]  ;;  %v147_v14 = vrot.slane %v125_v11, 3  ;;  %v162_v15 = vsel %vm161_vm3, %v160_v12, %v144_v10  ;;  %s132_s28 = scalar_lea.vmem %s319_s1, %s131_s16 }
  0x25   : > { %v150_v16 = vrot.slane %v129_v13, 2  ;;  %v133_v17 = vld [vmem:[%s132_s28] sm:$0x1] }
  0x26   : > { %v164_v18 = vsel %vm163_vm4, %v162_v15, %v147_v14  ;;  %v153_v19 = vrot.slane %v133_v17, 1 }
  0x27   : > { %v166_v20 = vsel %vm165_vm5, %v164_v18, %v150_v16 }
  0x28   : > { %v168_v21 = vsel %vm167_vm6, %v166_v20, %v153_v19 }
  0x29   : > { %169 = vst [vmem:[%s101_s3] sm:$0xff] %v168_v21 }
  0x2a PF: > { %s18_s14 = sadd.s32 1, %s256_s14  }
  0x2b   : > { %p15_p9 = scmp.ge.s32.totalorder %s18_s14, 5  }
  0x2d   :  { %17 = sbr.rel (!%p15_p9) target bundleno = 16 (0x10), region = 59 }

</bundles_post_ra>
